<compile_context>
chip_gen: v7x
topology: tpu7x:2x2x1
jax: 0.10.0
libtpu: 0.0.40
codegen_flags: <defaults>
</compile_context>

<pallas_src>
import jax
import jax.numpy as jnp
from jax.experimental import pallas as pl
from jax.experimental.pallas import tpu as pltpu

NEG_SLOPE = 0.01  # F.leaky_relu default negative_slope


def _round_up(n, m):
    return (n + m - 1) // m * m


def _leaky_relu(x):
    return jnp.where(x > 0, x, NEG_SLOPE * x)


def decoder_kernel(x_ref, w1_ref, b1_ref, w2_ref, b2_ref, w3_ref, b3_ref, o_ref):
    # fc1 + leaky_relu (MXU in weight dtype, f32 accumulate, f32 elementwise)
    h1 = jnp.dot(x_ref[...], w1_ref[...], preferred_element_type=jnp.float32)
    h1 = _leaky_relu(h1 + b1_ref[...])
    # fc2 + leaky_relu
    h2 = jnp.dot(h1.astype(w2_ref.dtype), w2_ref[...],
                 preferred_element_type=jnp.float32)
    h2 = _leaky_relu(h2 + b2_ref[...])
    # fc3 (no activation)
    out = jnp.dot(h2.astype(w3_ref.dtype), w3_ref[...],
                  preferred_element_type=jnp.float32)
    o_ref[...] = (out + b3_ref[...]).astype(o_ref.dtype)


def decoder_forward(x, params, *, block_b=512, mxu_dtype=jnp.bfloat16):
    """x: (B, latent_dim) float32. params: dict of w1,b1,w2,b2,w3,b3 (f32).

    Returns (B, output_dim) float32, matching torch Decoder.forward.
    """
    w1, b1, w2, b2, w3, b3 = (
        params["w1"], params["b1"], params["w2"],
        params["b2"], params["w3"], params["b3"],
    )
    B, latent = x.shape
    out_dim = w3.shape[1]

    # --- pad layer widths to lane multiples of 128 (zeros keep numerics) ---
    H1 = _round_up(w1.shape[1], 128)   # 100 -> 128
    H2 = _round_up(w2.shape[1], 128)   # 300 -> 384
    OUTP = _round_up(out_dim, 128)     # e.g. 64 -> 128

    def pad_w(w, rows, cols):
        return jnp.zeros((rows, cols), w.dtype).at[:w.shape[0], :w.shape[1]].set(w)

    def pad_b(b, cols):
        return jnp.zeros((1, cols), jnp.float32).at[:, :b.shape[1]].set(
            b.astype(jnp.float32))

    w1p = pad_w(w1, latent, H1).astype(mxu_dtype)
    w2p = pad_w(w2, H1, H2).astype(mxu_dtype)
    w3p = pad_w(w3, H2, OUTP).astype(mxu_dtype)
    b1p = pad_b(b1, H1)
    b2p = pad_b(b2, H2)
    b3p = pad_b(b3, OUTP)

    # --- batch tiling: TB rows per grid step (sublane-aligned) ---
    TB = min(_round_up(B, 8), block_b)
    Bp = _round_up(B, TB)
    xp = x
    if Bp != B:
        xp = jnp.zeros((Bp, latent), x.dtype).at[:B].set(x)
    xp = xp.astype(mxu_dtype)

    grid = (Bp // TB,)

    # --- VMEM budget: weights (resident) + double-buffered x/out tiles ---
    isz = jnp.dtype(mxu_dtype).itemsize
    weight_bytes = (latent * H1 + H1 * H2 + H2 * OUTP) * isz + (H1 + H2 + OUTP) * 4
    stream_bytes = 2 * TB * latent * isz + 2 * TB * OUTP * 4
    scratch_bytes = TB * (H1 + H2) * 4        # f32 intermediates
    vmem_limit = int(min(32 << 20,
                         max(4 << 20,
                             2 * (weight_bytes + stream_bytes + scratch_bytes))))

    resident = lambda a: pl.BlockSpec(a.shape, lambda i: (0,) * a.ndim)

    out_padded = pl.pallas_call(
        decoder_kernel,
        out_shape=jax.ShapeDtypeStruct((Bp, OUTP), jnp.float32),
        grid=grid,
        in_specs=[
            pl.BlockSpec((TB, latent), lambda i: (i, 0)),   # streamed x
            resident(w1p), resident(b1p),
            resident(w2p), resident(b2p),
            resident(w3p), resident(b3p),
        ],
        out_specs=pl.BlockSpec((TB, OUTP), lambda i: (i, 0)),  # streamed out
        compiler_params=pltpu.CompilerParams(
            dimension_semantics=("parallel",),
            vmem_limit_bytes=vmem_limit),
    )(xp, w1p, b1p, w2p, b2p, w3p, b3p)

    # slice padded batch rows / output lanes back off
    return out_padded[:B, :out_dim]


def init_params(key, latent_dim, output_dim):
    """Deterministic init mimicking nn.Linear's uniform(-1/sqrt(fan_in), ...)."""
    dims = [(latent_dim, 100), (100, 300), (300, output_dim)]
    params = {}
    for i, (fan_in, fan_out) in enumerate(dims, start=1):
        key, kw, kb = jax.random.split(key, 3)
        bound = 1.0 / (fan_in ** 0.5)
        params[f"w{i}"] = jax.random.uniform(
            kw, (fan_in, fan_out), jnp.float32, -bound, bound)
        params[f"b{i}"] = jax.random.uniform(
            kb, (1, fan_out), jnp.float32, -bound, bound)
    return params


def decoder_reference(x, params, cast_dtype=jnp.float32):
    """Pure-JAX reference; cast_dtype mirrors the kernel's MXU input dtype."""
    c = lambda a: a.astype(cast_dtype).astype(jnp.float32)
    h = jnp.dot(c(x), c(params["w1"]), preferred_element_type=jnp.float32)
    h = _leaky_relu(h + params["b1"])
    h = jnp.dot(c(h), c(params["w2"]), preferred_element_type=jnp.float32)
    h = _leaky_relu(h + params["b2"])
    h = jnp.dot(c(h), c(params["w3"]), preferred_element_type=jnp.float32)
    return h + params["b3"]


if __name__ == "__main__":
    latent_dim, output_dim, batch = 16, 64, 256

    key = jax.random.PRNGKey(0)
    key, kx = jax.random.split(key)
    x = jax.random.normal(kx, (batch, latent_dim), jnp.float32)
    params = init_params(key, latent_dim, output_dim)

    # block_b=128 -> grid of 2 steps, exercising the pipelined batch tiling.
    out = decoder_forward(x, params, block_b=128)
    jax.block_until_ready(out)
    assert out.shape == (batch, output_dim)

    # Tight check vs. a reference that uses the same bf16 MXU inputs.
    ref_bf16 = decoder_reference(x, params, cast_dtype=jnp.bfloat16)
    assert jnp.allclose(out, ref_bf16, atol=2e-3, rtol=2e-3), "mismatch vs bf16 ref"

    # Loose check vs. the pure-f32 PyTorch-equivalent forward.
    ref_f32 = decoder_reference(x, params, cast_dtype=jnp.float32)
    assert jnp.allclose(out, ref_f32, atol=5e-2, rtol=5e-2), "mismatch vs f32 ref"

    print("KERNEL_OK")
</pallas_src>

<mosaic_0001>
module attributes {stable_mosaic.version = 11 : i64} {
  func.func @decoder_kernel(%arg0: i32, %arg1: memref<128x16xbf16, #tpu.memory_space<vmem>>, %arg2: memref<16x128xbf16, #tpu.memory_space<vmem>>, %arg3: memref<1x128xf32, #tpu.memory_space<vmem>>, %arg4: memref<128x384xbf16, #tpu.memory_space<vmem>>, %arg5: memref<1x384xf32, #tpu.memory_space<vmem>>, %arg6: memref<384x128xbf16, #tpu.memory_space<vmem>>, %arg7: memref<1x128xf32, #tpu.memory_space<vmem>>, %arg8: memref<128x128xf32, #tpu.memory_space<vmem>>) attributes {dimension_semantics = [#tpu.dimension_semantics<parallel>], iteration_bounds = array<i64: 2>, scalar_prefetch = 0 : i64, scratch_operands = 0 : i64, tpu.core_type = #tpu.core_type<tc>, window_params = [{transform_indices = @transform_0, window_bounds = array<i64: 128, 16>}, {pipeline_mode = #tpu.pipeline_mode<synchronous>, transform_indices = @transform_1, window_bounds = array<i64: 16, 128>}, {pipeline_mode = #tpu.pipeline_mode<synchronous>, transform_indices = @transform_2, window_bounds = array<i64: 1, 128>}, {pipeline_mode = #tpu.pipeline_mode<synchronous>, transform_indices = @transform_3, window_bounds = array<i64: 128, 384>}, {pipeline_mode = #tpu.pipeline_mode<synchronous>, transform_indices = @transform_4, window_bounds = array<i64: 1, 384>}, {pipeline_mode = #tpu.pipeline_mode<synchronous>, transform_indices = @transform_5, window_bounds = array<i64: 384, 128>}, {pipeline_mode = #tpu.pipeline_mode<synchronous>, transform_indices = @transform_6, window_bounds = array<i64: 1, 128>}, {transform_indices = @transform_7, window_bounds = array<i64: 128, 128>}]} {
    %c0 = arith.constant 0 : index
    %c0_0 = arith.constant 0 : index
    %0 = vector.load %arg1[%c0, %c0_0] : memref<128x16xbf16, #tpu.memory_space<vmem>>, vector<128x16xbf16>
    %c0_1 = arith.constant 0 : index
    %c0_2 = arith.constant 0 : index
    %1 = vector.load %arg2[%c0_1, %c0_2] : memref<16x128xbf16, #tpu.memory_space<vmem>>, vector<16x128xbf16>
    %cst = arith.constant dense<0.000000e+00> : vector<128x128xf32>
    %2 = tpu.matmul %0, %1, %cst {dimension_numbers = #tpu.dot_dimension_numbers<[1], [0], [0], [1], [0, 0, 1, 1], [], []>} : vector<128x16xbf16>, vector<16x128xbf16>, vector<128x128xf32> -> vector<128x128xf32>
    %c0_3 = arith.constant 0 : index
    %c0_4 = arith.constant 0 : index
    %3 = vector.load %arg3[%c0_3, %c0_4] : memref<1x128xf32, #tpu.memory_space<vmem>>, vector<1x128xf32>
    %4 = vector.broadcast %3 : vector<1x128xf32> to vector<128x128xf32>
    %5 = arith.addf %2, %4 : vector<128x128xf32>
    %cst_5 = arith.constant 0.000000e+00 : f32
    %6 = vector.broadcast %cst_5 : f32 to vector<128x128xf32>
    %7 = arith.cmpf ogt, %5, %6 : vector<128x128xf32>
    %cst_6 = arith.constant 0.00999999977 : f32
    %8 = vector.broadcast %cst_6 : f32 to vector<128x128xf32>
    %9 = arith.mulf %8, %5 : vector<128x128xf32>
    %10 = arith.select %7, %5, %9 : vector<128x128xi1>, vector<128x128xf32>
    %11 = arith.truncf %10 : vector<128x128xf32> to vector<128x128xbf16>
    %c0_7 = arith.constant 0 : index
    %c0_8 = arith.constant 0 : index
    %12 = vector.load %arg4[%c0_7, %c0_8] : memref<128x384xbf16, #tpu.memory_space<vmem>>, vector<128x384xbf16>
    %cst_9 = arith.constant dense<0.000000e+00> : vector<128x384xf32>
    %13 = tpu.matmul %11, %12, %cst_9 {dimension_numbers = #tpu.dot_dimension_numbers<[1], [0], [0], [1], [0, 0, 1, 1], [], []>} : vector<128x128xbf16>, vector<128x384xbf16>, vector<128x384xf32> -> vector<128x384xf32>
    %c0_10 = arith.constant 0 : index
    %c0_11 = arith.constant 0 : index
    %14 = vector.load %arg5[%c0_10, %c0_11] : memref<1x384xf32, #tpu.memory_space<vmem>>, vector<1x384xf32>
    %15 = vector.broadcast %14 : vector<1x384xf32> to vector<128x384xf32>
    %16 = arith.addf %13, %15 : vector<128x384xf32>
    %cst_12 = arith.constant 0.000000e+00 : f32
    %17 = vector.broadcast %cst_12 : f32 to vector<128x384xf32>
    %18 = arith.cmpf ogt, %16, %17 : vector<128x384xf32>
    %cst_13 = arith.constant 0.00999999977 : f32
    %19 = vector.broadcast %cst_13 : f32 to vector<128x384xf32>
    %20 = arith.mulf %19, %16 : vector<128x384xf32>
    %21 = arith.select %18, %16, %20 : vector<128x384xi1>, vector<128x384xf32>
    %22 = arith.truncf %21 : vector<128x384xf32> to vector<128x384xbf16>
    %c0_14 = arith.constant 0 : index
    %c0_15 = arith.constant 0 : index
    %23 = vector.load %arg6[%c0_14, %c0_15] : memref<384x128xbf16, #tpu.memory_space<vmem>>, vector<384x128xbf16>
    %cst_16 = arith.constant dense<0.000000e+00> : vector<128x128xf32>
    %24 = tpu.matmul %22, %23, %cst_16 {dimension_numbers = #tpu.dot_dimension_numbers<[1], [0], [0], [1], [0, 0, 1, 1], [], []>} : vector<128x384xbf16>, vector<384x128xbf16>, vector<128x128xf32> -> vector<128x128xf32>
    %c0_17 = arith.constant 0 : index
    %c0_18 = arith.constant 0 : index
    %25 = vector.load %arg7[%c0_17, %c0_18] : memref<1x128xf32, #tpu.memory_space<vmem>>, vector<1x128xf32>
    %26 = vector.broadcast %25 : vector<1x128xf32> to vector<128x128xf32>
    %27 = arith.addf %24, %26 : vector<128x128xf32>
    %c0_19 = arith.constant 0 : index
    %c0_20 = arith.constant 0 : index
    %28 = vector.load %arg8[%c0_19, %c0_20] : memref<128x128xf32, #tpu.memory_space<vmem>>, vector<128x128xf32>
    tpu.vector_store %arg8[%c0_19, %c0_20], %27 {strides = array<i32>} : memref<128x128xf32, #tpu.memory_space<vmem>>, vector<128x128xf32>,
    return
  }
  func.func @transform_0(%arg0: i32) -> (i32, i32) {
    %c0_i32 = arith.constant 0 : i32
    %c0_i32_0 = arith.constant 0 : i32
    return %arg0, %c0_i32 : i32, i32
  }
  func.func @transform_1(%arg0: i32) -> (i32, i32) {
    %c0_i32 = arith.constant 0 : i32
    %c0_i32_0 = arith.constant 0 : i32
    %c0_i32_1 = arith.constant 0 : i32
    return %c0_i32, %c0_i32_0 : i32, i32
  }
  func.func @transform_2(%arg0: i32) -> (i32, i32) {
    %c0_i32 = arith.constant 0 : i32
    %c0_i32_0 = arith.constant 0 : i32
    %c0_i32_1 = arith.constant 0 : i32
    return %c0_i32, %c0_i32_0 : i32, i32
  }
  func.func @transform_3(%arg0: i32) -> (i32, i32) {
    %c0_i32 = arith.constant 0 : i32
    %c0_i32_0 = arith.constant 0 : i32
    %c0_i32_1 = arith.constant 0 : i32
    return %c0_i32, %c0_i32_0 : i32, i32
  }
  func.func @transform_4(%arg0: i32) -> (i32, i32) {
    %c0_i32 = arith.constant 0 : i32
    %c0_i32_0 = arith.constant 0 : i32
    %c0_i32_1 = arith.constant 0 : i32
    return %c0_i32, %c0_i32_0 : i32, i32
  }
  func.func @transform_5(%arg0: i32) -> (i32, i32) {
    %c0_i32 = arith.constant 0 : i32
    %c0_i32_0 = arith.constant 0 : i32
    %c0_i32_1 = arith.constant 0 : i32
    return %c0_i32, %c0_i32_0 : i32, i32
  }
  func.func @transform_6(%arg0: i32) -> (i32, i32) {
    %c0_i32 = arith.constant 0 : i32
    %c0_i32_0 = arith.constant 0 : i32
    %c0_i32_1 = arith.constant 0 : i32
    return %c0_i32, %c0_i32_0 : i32, i32
  }
  func.func @transform_7(%arg0: i32) -> (i32, i32) {
    %c0_i32 = arith.constant 0 : i32
    %c0_i32_0 = arith.constant 0 : i32
    return %arg0, %c0_i32 : i32, i32
  }
}

</mosaic_0001>

<bundles_post_ra>
// kernel: tpu_custom_call.1
= control target key start
LH: loop header
LB: loop body
LE: loop exit
PB: predicated region body
PF: predicated region fallthrough
CT: control target
= control target key end

     0   :  { %12 = vsyncpa [#allocation3], 0  ;;  %s2585_s0 = inlined_call_operand.vmem [shape: bf16[256,16], index: 0, kind: input, shape index: {}]   ;;  %s2586_s1 = inlined_call_operand.vmem [shape: bf16[16,128], index: 1, kind: input, shape index: {}]   ;;  %s2587_s2 = inlined_call_operand.vmem [shape: f32[1,128], index: 2, kind: input, shape index: {}]   ;;  %s2588_s3 = inlined_call_operand.hbm [shape: bf16[128,384], index: 3, kind: input, shape index: {}]   ;;  %s2589_s4 = inlined_call_operand.vmem [shape: f32[1,384], index: 4, kind: input, shape index: {}]   ;;  %s2590_s5 = inlined_call_operand.hbm [shape: bf16[384,128], index: 5, kind: input, shape index: {}]   ;;  %s2591_s6 = inlined_call_operand.vmem [shape: f32[1,128], index: 6, kind: input, shape index: {}]   ;;  %s2592_s7 = inlined_call_operand.hbm [shape: f32[256,128], index: 7, kind: output, shape index: {}]  }
   0x1   :  { %13 = vsyncpa [#allocation6], 0 }
   0x2   :  { %14 = vsyncpa [#allocation4], 0 }
   0x3   :  { %16 = vsyncpa [#allocation4 + $0x1], 0  ;;  %s2203_s24 = smov 0   ;;  %s2205_s25 = smov 0  }
   0x4   :  { %s2207_s26 = smov 0   ;;  %s2209_s27 = smov 0  }
   0x5 LB: > { %s2224_s28 = sadd.s32 4294967295, %s2151_s27   ;;  %s1622_s29 = sadd.s32 4294967294, %s2151_s27   ;;  %s2151_s27 = sphi %s2209_s27, %s2612_s27   ;;  %s2147_s26 = sphi %s2207_s26, %s2611_s26   ;;  %s2143_s25 = sphi %s2205_s25, %s2610_s25   ;;  %s2139_s24 = sphi %s2203_s24, %s2609_s24  }
   0x6   : > { %s2228_s30 = sadd.s32 1, %s2151_s27   ;;  %s181_s8 = sadd.s32 1, %s2147_s26 }
   0x7   : > { %s178_s9 = ssub.s32 %s2151_s27, %s2228_s30  ;;  %p191_p0 = scmp.ne.s32.totalorder %s2147_s26, %s2143_s25 }
   0x8   : > { %p179_p1 = scmp.eq.s32.totalorder %s178_s9, 0  ;;  %p192_p2 = scmp.eq.s32.totalorder %s2224_s28, 1 }
   0x9   : > { %p197_p3 = scmp.ne.s32.totalorder %s2143_s25, %s2139_s24  ;;  %p198_p4 = scmp.eq.s32.totalorder %s1622_s29, 1 }
   0xa   : > { %s2239_s10 = scalar_select %p179_p1, %s2147_s26, %s181_s8  }
   0xb   : > { %p2241_p5 = por %p192_p2, %p191_p0  ;;  %p2245_p6 = por %p198_p4, %p197_p3 }
   0xc   : > { %2596 = sst [smem:[#allocation11_spill]] %s2239_s10  ;;  %p1623_p7 = scmp.ge.s32.totalorder %s2151_s27, 1 }
   0xd   : > { %s2597_s11 = scalar_select %p2241_p5, 1, 0 }
   0xe   : > { %s2598_s12 = scalar_select %p2245_p6, 1, 0 }
   0xf   : > { %p205_p8 = scmp.lt.s32.totalorder %s2151_s27, 3  ;;  %p2593_p9 = scmp.eq.s32.totalorder %s2224_s28, 0 }
  0x10   : > { %s2153_s14 = smov [#allocation2]   ;;  %s2154_s17 = smov [#allocation5]  }
  0x11   : > { %p2252_p10 = pnand %p1623_p7, %p205_p8  ;;  %s223_s15 = sshll.u32 %s2153_s14, 4  ;;  %s224_s15 = int_to_ptr.vmem [resolvable:$true] %s223_s15 }
  0x12   : > { %s239_s18 = sshll.u32 %s2154_s17, 4  ;;  %s2025_s21 = scalar_lea.hbm %s2588_s3, 3072  ;;  %s2264_s18 = int_to_ptr.vmem [resolvable:$true] %s239_s18 }
  0x13   : > { %s2599_s13 = scalar_select %p2252_p10, 1, 0 }
  0x14   : > { %p1903_p11 = pneg %p2252_p10  ;;  %p2026_p13 = scmp.ne.s32.totalorder %s2588_s3, %s2025_s21 }
  0x15   : > { %p2032_p3 = scmp.lt.u32.totalorder %s2025_s21, %s2588_s3 }
  0x16   : > { %p2260_p12 = pnand %p2593_p9, %p1903_p11 }
  0x18   : > { %p2027_p0 = pneg %p2260_p12 }
  0x1a   : > { %p2028_p1 = pnand %p2027_p0, %p2026_p13 }
  0x1c   : > { %p2029_p2 = pneg %p2028_p1 }
  0x1e   : > { %p2034_p4 = pnand %p2032_p3, %p2029_p2 }
  0x20   : > { %2037 = shalt.err (!%p2034_p4)
}
  0x21   : > { %s2038_s9 = scalar_lea.vmem %s224_s15, 3072  ;;  %p2046_p9 = scmp.lt.s32.totalorder %s224_s15, %s224_s15 }
  0x22   : > { %p2039_p7 = scmp.ne.s32.totalorder %s224_s15, %s2038_s9  ;;  %p2047_p6 = scmp.lt.s32.totalorder %s2038_s9, %s2038_s9 }
  0x24   : > { %p2041_p8 = pnand %p2039_p7, %p2027_p0  ;;  %p2048_p5 = por %p2047_p6, %p2046_p9 }
  0x26   : > { %p2042_p11 = pneg %p2041_p8 }
  0x28   : > { %p2049_p10 = pnand %p2048_p5, %p2042_p11 }
  0x2a   : > { %2052 = shalt.err (!%p2049_p10)
}
  0x2b   : > { %s2155_s14 = smov 192   ;;  %s2156_s17 = smov 12  }
  0x2c   : > { %1906 = dma.hbm_to_vmem [thread:$0]  (!%p2260_p12), %s2588_s3, 3072, %s224_s15, [#allocation3], %s2155_s14, %s2155_s14, %s2156_s17  }
  0x2d   : > { %s2053_s23 = scalar_lea.hbm %s2590_s5, 3072 }
  0x2e   : > { %p2054_p13 = scmp.ne.s32.totalorder %s2590_s5, %s2053_s23  ;;  %p2060_p9 = scmp.lt.u32.totalorder %s2053_s23, %s2590_s5 }
  0x30   : > { %p2056_p5 = pnand %p2054_p13, %p2027_p0 }
  0x32   : > { %p2057_p6 = pneg %p2056_p5 }
  0x34   : > { %p2062_p10 = pnand %p2060_p9, %p2057_p6 }
  0x36   : > { %2065 = shalt.err (!%p2062_p10)
}
  0x37   : > { %s2066_s15 = scalar_lea.vmem %s2264_s18, 3072  ;;  %p2074_p4 = scmp.lt.s32.totalorder %s2264_s18, %s2264_s18 }
  0x38   : > { %p2067_p1 = scmp.ne.s32.totalorder %s2264_s18, %s2066_s15  ;;  %p2075_p7 = scmp.lt.s32.totalorder %s2066_s15, %s2066_s15 }
  0x3a   : > { %p2069_p2 = pnand %p2067_p1, %p2027_p0  ;;  %p2076_p8 = por %p2075_p7, %p2074_p4 }
  0x3c   : > { %p2070_p3 = pneg %p2069_p2 }
  0x3e   : > { %p2077_p11 = pnand %p2076_p8, %p2070_p3 }
  0x40   : > { %2080 = shalt.err (!%p2077_p11)
}
  0x41   : > { %s2157_s10 = smov 64   ;;  %s2158_s14 = smov 4  }
  0x42   : > { %1909 = dma.hbm_to_vmem [thread:$0]  (!%p2260_p12), %s2590_s5, 3072, %s2264_s18, [#allocation6], %s2157_s10, %s2157_s10, %s2158_s14  }
  0x43   : > { %p2601_p13 = scmp.ne.s32.totalorder %s2599_s13, 0 }
  0x44   : > { %p2602_p0 = scmp.eq.s32.totalorder (!%p2601_p13), %s2224_s28, 0 }
  0x45   : > { %267 = sbr.rel (%p2601_p13) target bundleno = 830 (0x33e), region = 48 }
  0x4c   : > { %2126 = dma.done.wait (%p2602_p0), [#allocation3], 3072   ;;  %p2603_p5 = pmov %p2602_p0 }
  0x4d   : > { %p2604_p6 = pmov %p2602_p0 }
  0x4e   : > { %2128 = vsyncadd (%p2603_p5), [#allocation3], 4294964224 }
  0x4f   : > { %2130 = dma.done.wait (%p2604_p6), [#allocation6], 3072   ;;  %p2605_p9 = pmov %p2602_p0 }
  0x50   : > { %s1631_s16 = sshll.u32 %s2224_s28, 4  ;;  %v1960_v0 = vld [vmem:[%s2586_s1] sm:$0xff]   ;;  %vm382_vm0 = vcmask 130048   ;;  %v1972_v8 = vld [vmem:[#allocation2 + $0x8] ss:$12 sps:$4 sm:$0xff]   ;;  %v2159_v33 = vmov 0  }
  0x51   : > { %2132 = vsyncadd (%p2605_p9), [#allocation6], 4294964224  ;;  %p304_p10 = scmp.lt.s32.totalorder %s1631_s16, 31  ;;  %1811 = vmatprep.subr.bf16.mxu0 %v1960_v0  ;;  %v1969_v6 = vld [vmem:[#allocation2 + $0x4] ss:$12 sps:$4 sm:$0xff]   ;;  %769 = vmatprep.mubr.bf16.mxu1 %v2159_v33  ;;  %v2004_v61 = vld [vmem:[#allocation5 + $0x48] sm:$0xff]  }
  0x52   : > { %1812 = vmatpush3.bf16.msra.mxu0 %v1960_v0  ;;  %v1971_v7 = vld [vmem:[#allocation2] ss:$12 sps:$4 sm:$0xff]   ;;  %737 = vmatprep.subr.bf16.mxu1 %v1969_v6  ;;  %v1973_v9 = vld [vmem:[#allocation2 + $0x1c] ss:$12 sps:$4 sm:$0xff]   ;;  %v1975_v10 = vld [vmem:[#allocation2 + $0x18] ss:$12 sps:$4 sm:$0xff]  }
  0x53   : > { %s2614_s16 = smov (!%p304_p10, %s1631_s16), 31  ;;  %738 = vmatpush1.bf16.msra.mxu1 %v1971_v7  ;;  %1829 = vmatprep.subr.bf16.mxu0 %v1972_v8  ;;  %v1976_v11 = vld [vmem:[#allocation2 + $0x20] ss:$12 sps:$4 sm:$0xff]   ;;  %v1979_v13 = vld [vmem:[#allocation2 + $0x30] ss:$12 sps:$4 sm:$0xff]   ;;  %s300_s10 = sand.u32 1, %s2143_s25  }
  0x54   : > { %s1632_s18 = sshll.u32 %s2614_s16, 2  ;;  %739 = vmatprep.subr.bf16.mxu1 %v1973_v9  ;;  %v1977_v12 = vld [vmem:[#allocation2 + $0x34] ss:$12 sps:$4 sm:$0xff]   ;;  %v1980_v14 = vld [vmem:[#allocation2 + $0x38] ss:$12 sps:$4 sm:$0xff]   ;;  %v2006_v62 = vld [vmem:[#allocation5 + $0x88] sm:$0xff]  }
  0x55   : > { %s2327_s21 = scalar_lea.vmem %s2585_s0, %s1632_s18  ;;  %v1981_v15 = vld [vmem:[#allocation2 + $0x4c] ss:$12 sps:$4 sm:$0xff]   ;;  %v1983_v18 = vld [vmem:[#allocation2 + $0x48] ss:$12 sps:$4 sm:$0xff]   ;;  %v1984_v19 = vld [vmem:[#allocation2 + $0x50] ss:$12 sps:$4 sm:$0xff]  }
  0x56   : > { %v1961_v1 = vld [vmem:[%s2327_s21] sm:$0xff]   ;;  %v1962_v2 = vld [vmem:[%s2327_s21 + $0x8] sm:$0xff]   ;;  %v1963_v3 = vld [vmem:[%s2327_s21 + $0x10] sm:$0xff]   ;;  %s1630_s19 = sshll.u32 %s300_s10, 7  ;;  %s1705_s18 = sshll.u32 %s2224_s28, 11 }
  0x57   : > { %1813 = vmatprep.mubr.msk.bf16.mxu0 %vm382_vm0, %v1961_v1  ;;  %v1964_v4 = vld [vmem:[%s2327_s21 + $0x18] sm:$0xff]   ;;  %v1965_v5 = vld [vmem:[%s2327_s21 + $0x20] sm:$0xff]   ;;  %740 = vmatpush1.bf16.msra.mxu1 %v1975_v10  ;;  %v1966_v16 = vld [vmem:[%s2327_s21 + $0x28] sm:$0xff]   ;;  %s2501_s16 = scalar_lea.vmem [#allocation7], %s1630_s19  ;;  %s2536_s22 = scalar_lea.hbm %s2592_s7, %s1705_s18 }
  0x58   : > { %1814 = vmatmul.mubr.msk.bf16.vlgmr.msra.gmra.mrb[0].mxu0 %vm382_vm0, %v1962_v2  ;;  %741 = vmatprep.subr.bf16.mxu1 %v1977_v12  ;;  %v1967_v17 = vld [vmem:[%s2327_s21 + $0x30] sm:$0xff]   ;;  %v1987_v21 = vld [vmem:[#allocation2 + $0x60] ss:$12 sps:$4 sm:$0xff]   ;;  %v1989_v23 = vld [vmem:[#allocation2 + $0x7c] ss:$12 sps:$4 sm:$0xff]   ;;  %s1538_s20 = sshll.u32 %s2501_s16, 4  ;;  %s2538_s20 = int_to_ptr.vmem [resolvable:$true] %s1538_s20 }
  0x59   : > { %1817 = vmatprep.mubr.msk.bf16.mxu0 %vm382_vm0, %v1963_v3  ;;  %1830 = vmatpush3.bf16.msra.mxu0 %v1972_v8  ;;  %v1985_v20 = vld [vmem:[#allocation2 + $0x64] ss:$12 sps:$4 sm:$0xff]   ;;  %v1988_v22 = vld [vmem:[#allocation2 + $0x68] ss:$12 sps:$4 sm:$0xff]   ;;  %v1968_v24 = vld [vmem:[%s2327_s21 + $0x38] sm:$0xff]   ;;  %s2544_s23 = scalar_lea.sflag [#allocation4], %s300_s10 }
  0x5a   : > { %1831 = vmatprep.subr.bf16.mxu0 %v1976_v11  ;;  %v1991_v25 = vld [vmem:[#allocation2 + $0x78] ss:$12 sps:$4 sm:$0xff]   ;;  %v1992_v26 = vld [vmem:[#allocation2 + $0x80] ss:$12 sps:$4 sm:$0xff]   ;;  %v1995_v28 = vld [vmem:[#allocation2 + $0x90] ss:$12 sps:$4 sm:$0xff]  }
  0x5b   : > { %742 = vmatpush1.bf16.msra.mxu1 %v1979_v13  ;;  %v1993_v27 = vld [vmem:[#allocation2 + $0x94] ss:$12 sps:$4 sm:$0xff]   ;;  %v1996_v29 = vld [vmem:[#allocation2 + $0x98] ss:$12 sps:$4 sm:$0xff]   ;;  %v2000_v32 = vld [vmem:[#allocation2 + $0xb0] ss:$12 sps:$4 sm:$0xff]  }
  0x5c   : > { %743 = vmatprep.subr.bf16.mxu1 %v1981_v15  ;;  %v1997_v30 = vld [vmem:[#allocation2 + $0xac] ss:$12 sps:$4 sm:$0xff]   ;;  %v1999_v31 = vld [vmem:[#allocation2 + $0xa8] ss:$12 sps:$4 sm:$0xff]   ;;  %v2001_v34 = vld [vmem:[#allocation5 + $0x40] sm:$0xff]   ;;  %s2081_s28 = scalar_lea.vmem %s2538_s20, 2048 }
  0x5d   : > { %1832 = vmatpush3.bf16.msra.mxu0 %v1976_v11  ;;  %v2003_v35 = vld [vmem:[#allocation5 + $0x80] sm:$0xff]   ;;  %v2005_v6 = vld [vmem:[#allocation5 + $0x8] sm:$0xff]   ;;  %v2007_v9 = vld [vmem:[#allocation5 + $0x50] sm:$0xff]   ;;  %p2082_p12 = scmp.ne.s32.totalorder %s2538_s20, %s2081_s28  ;;  %p2606_p1 = scmp.ne.s32.totalorder %s2597_s11, 0 }
  0x5e   : > { %1833 = vmatprep.subr.bf16.mxu0 %v1980_v14  ;;  %v2352_v36 = vld [vmem:[%s2587_s2] ss:$0 sm:$0xff]  ;;  %v2009_v10 = vld [vmem:[#allocation5 + $0x90] sm:$0xff]   ;;  %s2160_s29 = smov [#allocation7]  }
  0x5f   : > { %744 = vmatpush1.bf16.msra.mxu1 %v1983_v18  ;;  %v2002_v58 = vld [vmem:[#allocation5] sm:$0xff]   ;;  %v2008_v18 = vld [vmem:[#allocation5 + $0x10] sm:$0xff]   ;;  %p2083_p2 = pnand %p2082_p12, %p2606_p1  ;;  %s2085_s8 = sshll.u32 %s2160_s29, 4  ;;  %s2086_s8 = int_to_ptr.vmem [resolvable:$false] %s2085_s8 }
  0x60   : > { %1818 = vmatmul.mubr.msk.bf16.gmra.mrb[4].mxu0 %vm382_vm0, %v1964_v4  ;;  %745 = vmatprep.subr.bf16.mxu1 %v1985_v20  ;;  %s2087_s9 = scalar_lea.vmem %s2086_s8, 4096  ;;  %p2088_p4 = scmp.lt.s32.totalorder %s2538_s20, %s2086_s8 }
  0x61   : > { %1821 = vmatprep.mubr.msk.bf16.mxu0 %vm382_vm0, %v1965_v5  ;;  %1834 = vmatpush3.bf16.msra.mxu0 %v1980_v14  ;;  %p2084_p3 = pneg %p2083_p2  ;;  %p2089_p7 = scmp.lt.s32.totalorder %s2087_s9, %s2081_s28 }
  0x62   : > { %1835 = vmatprep.subr.bf16.mxu0 %v1984_v19 }
  0x63   : > { %746 = vmatpush1.bf16.msra.mxu1 %v1987_v21  ;;  %v2010_v21 = vld [vmem:[#allocation5 + $0x58] sm:$0xff]   ;;  %p2090_p8 = por %p2089_p7, %p2088_p4 }
  0x64   : > { %747 = vmatprep.subr.bf16.mxu1 %v1989_v23 }
  0x65   : > { %1836 = vmatpush3.bf16.msra.mxu0 %v1984_v19  ;;  %p2091_p11 = pnand %p2090_p8, %p2084_p3 }
  0x66   : > { %1837 = vmatprep.subr.bf16.mxu0 %v1988_v22 }
  0x67   : > { %748 = vmatpush1.bf16.msra.mxu1 %v1991_v25 }
  0x68   : > { %1822 = vmatmul.mubr.msk.bf16.gmra.mrb[8].mxu0 %vm382_vm0, %v1966_v16  ;;  %749 = vmatprep.subr.bf16.mxu1 %v1993_v27 }
  0x69   : > { %1825 = vmatprep.mubr.msk.bf16.mxu0 %vm382_vm0, %v1967_v17  ;;  %1838 = vmatpush3.bf16.msra.mxu0 %v1988_v22  ;;  %v2012_v22 = vld [vmem:[#allocation5 + $0x98] sm:$0xff]  }
  0x6a   : > { %1839 = vmatprep.subr.bf16.mxu0 %v1992_v26 }
  0x6b   : > { %750 = vmatpush1.bf16.msra.mxu1 %v1995_v28 }
  0x6c   : > { %751 = vmatprep.subr.bf16.mxu1 %v1997_v30  ;;  %v2011_v30 = vld [vmem:[#allocation5 + $0x18] sm:$0xff]  }
  0x6d   : > { %1840 = vmatpush3.bf16.msra.mxu0 %v1992_v26 }
  0x6e   : > { %1841 = vmatprep.subr.bf16.mxu0 %v1996_v29 }
  0x6f   : > { %752 = vmatpush1.bf16.msra.mxu1 %v1999_v31 }
  0x70   : > { %1826 = vmatmul.mubr.msk.bf16.gmra.mrb[12].mxu0 %vm382_vm0, %v1968_v24  ;;  %1861 = vmatprep.subr.bf16.mxu1 %v2003_v35 }
  0x71   : > { %1842 = vmatpush3.bf16.msra.mxu0 %v1996_v29 }
  0x72   : > { %1843 = vmatprep.subr.bf16.mxu0 %v2000_v32 }
  0x75   : > { %1844 = vmatpush3.bf16.msra.mxu0 %v2000_v32 }
  0x76   : > { %1731 = vmatprep.subr.bf16.mxu0 %v2001_v34  ;;  %v2013_v34 = vld [vmem:[#allocation5 + $0x60] sm:$0xff]  }
 0x12b   : > { %v1815_v37 = vpop.f32.mrb[0].mxu0 }
 0x12c   : > { %v450_v38 = vadd.f32 %v1815_v37, %v2352_v36  ;;  %v441_v39 = vpop.f32.mrb[1].mxu0 }
 0x12d   : > { %v442_v40 = vadd.f32 %v2352_v36, %v441_v39  ;;  %v1816_v41 = vpop.f32.mrb[2].mxu0 }
 0x12e   : > { %v522_v42 = vmul.f32 0.01, %v450_v38  ;;  %v453_v43 = vadd.f32 %v1816_v41, %v2352_v36  ;;  %v444_v44 = vpop.f32.mrb[3].mxu0  ;;  %vm506_vm1 = vcmp.gt.f32.partialorder %v450_v38, 0.0 }
 0x12f   : > { %v520_v45 = vmul.f32 0.01, %v442_v40  ;;  %v445_v46 = vadd.f32 %v2352_v36, %v444_v44  ;;  %vm504_vm2 = vcmp.gt.f32.partialorder %v442_v40, 0.0  ;;  %v2014_v44 = vld [vmem:[#allocation5 + $0x20] sm:$0xff]  }
 0x130   : > { %vm507_vm3 = vcmp.gt.f32.partialorder %v453_v43, 0.0  ;;  %v523_v47 = vmul.f32 0.01, %v453_v43  ;;  %v538_v49 = vsel %vm506_vm1, %v450_v38, %v522_v42 }
 0x131   : > { %vm505_vm4 = vcmp.gt.f32.partialorder %v445_v46, 0.0  ;;  %v521_v48 = vmul.f32 0.01, %v445_v46  ;;  %v536_v53 = vsel %vm504_vm2, %v442_v40, %v520_v45 }
 0x132   : > { %v539_v50 = vsel %vm507_vm3, %v453_v43, %v523_v47  ;;  %v2016_v47 = vld [vmem:[#allocation5 + $0x68] sm:$0xff]  }
 0x133   : > { %v553_v51 = vpack.c.bf16 %v539_v50, %v538_v49  ;;  %v1819_v52 = vpop.f32.mrb[4].mxu0  ;;  %v537_v54 = vsel %vm505_vm4, %v445_v46, %v521_v48 }
 0x134   : > { %v466_v55 = vadd.f32 %v1819_v52, %v2352_v36  ;;  %v457_v56 = vpop.f32.mrb[5].mxu0  ;;  %v552_v57 = vpack.c.bf16 %v537_v54, %v536_v53 }
 0x135   : > { %v458_v59 = vadd.f32 %v2352_v36, %v457_v56  ;;  %v1820_v60 = vpop.f32.mrb[6].mxu0 }
 0x136   : > { %vm510_vm5 = vcmp.gt.f32.partialorder %v466_v55, 0.0  ;;  %v526_v63 = vmul.f32 0.01, %v466_v55  ;;  %v469_v0 = vadd.f32 %v1820_v60, %v2352_v36  ;;  %v460_v1 = vpop.f32.mrb[7].mxu0  ;;  %770 = vmatmul.mubr.bf16.vlgmr.msra.gmra.mrb[0].mxu1 %v552_v57  ;;  %1845 = vmatprep.mubr.bf16.mxu0 %v552_v57 }
 0x137   : > { %vm508_vm6 = vcmp.gt.f32.partialorder %v458_v59, 0.0  ;;  %v524_v2 = vmul.f32 0.01, %v458_v59  ;;  %v461_v3 = vadd.f32 %v2352_v36, %v460_v1  ;;  %1846 = vmatmul.mubr.bf16.vlgmr.msra.gmra.mrb[16].mxu0 %v553_v51  ;;  %779 = vmatprep.mubr.bf16.mxu1 %v2159_v33  ;;  %v2022_v1 = vld [vmem:[#allocation5 + $0x78] sm:$0xff]  }
 0x138   : > { %vm511_vm7 = vcmp.gt.f32.partialorder %v469_v0, 0.0  ;;  %v527_v4 = vmul.f32 0.01, %v469_v0  ;;  %v542_v5 = vsel %vm510_vm5, %v466_v55, %v526_v63  ;;  %1732 = vmatpush3.bf16.msra.mxu0 %v2002_v58  ;;  %1862 = vmatpush3.bf16.msra.mxu1 %v2003_v35  ;;  %v2015_v35 = vld [vmem:[#allocation5 + $0xa0] sm:$0xff]   ;;  %v2020_v63 = vld [vmem:[#allocation5 + $0x30] sm:$0xff]  }
 0x139   : > { %vm509_vm8 = vcmp.gt.f32.partialorder %v461_v3, 0.0  ;;  %v525_v7 = vmul.f32 0.01, %v461_v3  ;;  %v540_v8 = vsel %vm508_vm6, %v458_v59, %v524_v2  ;;  %1733 = vmatprep.subr.bf16.mxu0 %v2004_v61  ;;  %1863 = vmatprep.subr.bf16.mxu1 %v2006_v62  ;;  %v2018_v61 = vld [vmem:[#allocation5 + $0xa8] sm:$0xff]   ;;  %v2023_v2 = vld [vmem:[#allocation5 + $0x38] sm:$0xff]  }
 0x13a   : > { %v543_v11 = vsel %vm511_vm7, %v469_v0, %v527_v4  ;;  %v2021_v0 = vld [vmem:[#allocation5 + $0xb0] sm:$0xff]  }
 0x13b   : > { %v1823_v12 = vpop.f32.mrb[8].mxu0  ;;  %v541_v13 = vsel %vm509_vm8, %v461_v3, %v525_v7  ;;  %v2363_v14 = vpack.c.bf16 %v543_v11, %v542_v5  ;;  %v2024_v3 = vld [vmem:[#allocation5 + $0xb8] sm:$0xff]  }
 0x13c   : > { %v482_v15 = vadd.f32 %v1823_v12, %v2352_v36  ;;  %v473_v16 = vpop.f32.mrb[9].mxu0  ;;  %v554_v17 = vpack.c.bf16 %v541_v13, %v540_v8  ;;  %1734 = vmatpush3.bf16.msra.mxu0 %v2005_v6  ;;  %1864 = vmatpush3.bf16.msra.mxu1 %v2006_v62  ;;  %v2019_v62 = vld [vmem:[#allocation5 + $0x70] sm:$0xff]   ;;  %v592_v6 = vld [vmem:[%s2589_s4] sm:$0x7] }
 0x13d   : > { %v474_v19 = vadd.f32 %v2352_v36, %v473_v16  ;;  %v1824_v20 = vpop.f32.mrb[10].mxu0  ;;  %1735 = vmatprep.subr.bf16.mxu0 %v2007_v9  ;;  %1865 = vmatprep.subr.bf16.mxu1 %v2009_v10 }
 0x13e   : > { %vm514_vm9 = vcmp.gt.f32.partialorder %v482_v15, 0.0  ;;  %v530_v23 = vmul.f32 0.01, %v482_v15  ;;  %v485_v24 = vadd.f32 %v1824_v20, %v2352_v36  ;;  %780 = vmatmul.mubr.bf16.gmra.mrb[4].mxu1 %v553_v51  ;;  %1849 = vmatprep.mubr.bf16.mxu0 %v554_v17  ;;  %v476_v25 = vpop.f32.mrb[11].mxu0 }
 0x13f   : > { %vm512_vm10 = vcmp.gt.f32.partialorder %v474_v19, 0.0  ;;  %v528_v26 = vmul.f32 0.01, %v474_v19  ;;  %v477_v27 = vadd.f32 %v2352_v36, %v476_v25  ;;  %1850 = vmatmul.mubr.bf16.gmra.mrb[20].mxu0 %v2363_v14  ;;  %789 = vmatprep.mubr.bf16.mxu1 %v2159_v33 }
 0x140   : > { %vm515_vm11 = vcmp.gt.f32.partialorder %v485_v24, 0.0  ;;  %v531_v28 = vmul.f32 0.01, %v485_v24  ;;  %v546_v29 = vsel %vm514_vm9, %v482_v15, %v530_v23  ;;  %1736 = vmatpush3.bf16.msra.mxu0 %v2008_v18  ;;  %1866 = vmatpush3.bf16.msra.mxu1 %v2009_v10 }
 0x141   : > { %vm513_vm12 = vcmp.gt.f32.partialorder %v477_v27, 0.0  ;;  %v529_v31 = vmul.f32 0.01, %v477_v27  ;;  %v544_v32 = vsel %vm512_vm10, %v474_v19, %v528_v26  ;;  %1737 = vmatprep.subr.bf16.mxu0 %v2010_v21  ;;  %1867 = vmatprep.subr.bf16.mxu1 %v2012_v22 }
 0x142   : > { %v547_v37 = vsel %vm515_vm11, %v485_v24, %v531_v28 }
 0x143   : > { %v545_v38 = vsel %vm513_vm12, %v477_v27, %v529_v31  ;;  %v557_v39 = vpack.c.bf16 %v547_v37, %v546_v29  ;;  %v1827_v40 = vpop.f32.mrb[12].mxu0 }
 0x144   : > { %v556_v41 = vpack.c.bf16 %v545_v38, %v544_v32  ;;  %v498_v42 = vadd.f32 %v1827_v40, %v2352_v36  ;;  %v489_v43 = vpop.f32.mrb[13].mxu0  ;;  %1738 = vmatpush3.bf16.msra.mxu0 %v2011_v30  ;;  %1868 = vmatpush3.bf16.msra.mxu1 %v2012_v22 }
 0x145   : > { %v490_v45 = vadd.f32 %v2352_v36, %v489_v43  ;;  %v1828_v46 = vpop.f32.mrb[14].mxu0  ;;  %1739 = vmatprep.subr.bf16.mxu0 %v2013_v34  ;;  %1869 = vmatprep.subr.bf16.mxu1 %v2015_v35 }
 0x146   : > { %790 = vmatmul.mubr.bf16.gmra.mrb[8].mxu1 %v554_v17  ;;  %1853 = vmatprep.mubr.bf16.mxu0 %v556_v41  ;;  %vm518_vm13 = vcmp.gt.f32.partialorder %v498_v42, 0.0  ;;  %v534_v48 = vmul.f32 0.01, %v498_v42  ;;  %v501_v49 = vadd.f32 %v1828_v46, %v2352_v36  ;;  %v492_v50 = vpop.f32.mrb[15].mxu0 }
 0x147   : > { %1854 = vmatmul.mubr.bf16.gmra.mrb[24].mxu0 %v557_v39  ;;  %vm516_vm14 = vcmp.gt.f32.partialorder %v490_v45, 0.0  ;;  %v532_v51 = vmul.f32 0.01, %v490_v45  ;;  %799 = vmatprep.mubr.bf16.mxu1 %v2159_v33  ;;  %v493_v52 = vadd.f32 %v2352_v36, %v492_v50  ;;  %v2017_v36 = vld [vmem:[#allocation5 + $0x28] sm:$0xff]  }
 0x148   : > { %vm519_vm15 = vcmp.gt.f32.partialorder %v501_v49, 0.0  ;;  %v535_v53 = vmul.f32 0.01, %v501_v49  ;;  %v550_v54 = vsel %vm518_vm13, %v498_v42, %v534_v48  ;;  %1740 = vmatpush3.bf16.msra.mxu0 %v2014_v44  ;;  %1870 = vmatpush3.bf16.msra.mxu1 %v2015_v35 }
 0x149   : > { %vm517_vm0 = vcmp.gt.f32.partialorder %v493_v52, 0.0  ;;  %v533_v55 = vmul.f32 0.01, %v493_v52  ;;  %v548_v56 = vsel %vm516_vm14, %v490_v45, %v532_v51  ;;  %1741 = vmatprep.subr.bf16.mxu0 %v2016_v47  ;;  %1871 = vmatprep.subr.bf16.mxu1 %v2018_v61 }
 0x14a   : > { %v551_v57 = vsel %vm519_vm15, %v501_v49, %v535_v53 }
 0x14b   : > { %v549_v58 = vsel %vm517_vm0, %v493_v52, %v533_v55  ;;  %v559_v59 = vpack.c.bf16 %v551_v57, %v550_v54 }
 0x14c   : > { %v558_v60 = vpack.c.bf16 %v549_v58, %v548_v56  ;;  %1742 = vmatpush3.bf16.msra.mxu0 %v2017_v36  ;;  %1872 = vmatpush3.bf16.msra.mxu1 %v2018_v61 }
 0x14d   : > { %1743 = vmatprep.subr.bf16.mxu0 %v2019_v62  ;;  %1873 = vmatprep.subr.bf16.mxu1 %v2021_v0 }
 0x14e   : > { %800 = vmatmul.mubr.bf16.gmra.mrb[12].mxu1 %v2363_v14  ;;  %1857 = vmatprep.mubr.bf16.mxu0 %v558_v60 }
 0x14f   : > { %809 = vmatprep.mubr.bf16.mxu1 %v2159_v33  ;;  %1858 = vmatmul.mubr.bf16.gmra.mrb[28].mxu0 %v559_v59 }
 0x150   : > { %1744 = vmatpush3.bf16.msra.mxu0 %v2020_v63  ;;  %1874 = vmatpush3.bf16.msra.mxu1 %v2021_v0 }
 0x151   : > { %1745 = vmatprep.subr.bf16.mxu0 %v2022_v1  ;;  %1875 = vmatprep.subr.bf16.mxu1 %v2024_v3 }
 0x154   : > { %1746 = vmatpush3.bf16.msra.mxu0 %v2023_v2  ;;  %1876 = vmatpush3.bf16.msra.mxu1 %v2024_v3 }
 0x156   : > { %810 = vmatmul.mubr.bf16.gmra.mrb[16].mxu1 %v556_v41 }
 0x157   : > { %819 = vmatprep.mubr.bf16.mxu1 %v2159_v33 }
 0x15e   : > { %820 = vmatmul.mubr.bf16.gmra.mrb[20].mxu1 %v557_v39 }
 0x15f   : > { %829 = vmatprep.mubr.bf16.mxu1 %v2159_v33 }
 0x166   : > { %830 = vmatmul.mubr.bf16.gmra.mrb[24].mxu1 %v558_v60 }
 0x167   : > { %839 = vmatprep.mubr.bf16.mxu1 %v2159_v33  ;;  %v594_v33 = vlaneseq }
 0x169   : > { %v595_v4 = vshrl.u32 %v594_v33, 7 }
 0x16b   : > { %v596_v5 = vsub.s32 0, %v595_v4  ;;  %v600_v7 = vsub.s32 1, %v595_v4  ;;  %v604_v8 = vsub.s32 2, %v595_v4 }
 0x16d   : > { %v2384_v9 = vrot.slane %v592_v6, %v596_v5  ;;  %v2386_v10 = vrot.slane %v592_v6, %v600_v7  ;;  %v2388_v11 = vrot.slane %v592_v6, %v604_v8 }
 0x16e   : > { %840 = vmatmul.mubr.bf16.gmra.mrb[28].mxu1 %v559_v59 }
 0x209   : > { %v771_v12 = vpop.f32.mrb[0].mxu1 }
 0x20a   : > { %v772_v13 = vadd.f32 %v771_v12, %v2384_v9  ;;  %v773_v14 = vpop.f32.mrb[1].mxu1  ;;  %v1847_v15 = vpop.f32.mrb[16].mxu0 }
 0x20b   : > { %v774_v16 = vadd.f32 %v773_v14, %v2386_v10  ;;  %v893_v17 = vadd.f32 %v1847_v15, %v2388_v11  ;;  %v775_v18 = vpop.f32.mrb[2].mxu1  ;;  %v884_v19 = vpop.f32.mrb[17].mxu0 }
 0x20c   : > { %vm947_vm1 = vcmp.gt.f32.partialorder %v772_v13, 0.0  ;;  %v995_v20 = vmul.f32 0.01, %v772_v13  ;;  %v776_v21 = vadd.f32 %v775_v18, %v2384_v9  ;;  %v885_v22 = vadd.f32 %v884_v19, %v2388_v11  ;;  %v777_v23 = vpop.f32.mrb[3].mxu1  ;;  %v1848_v24 = vpop.f32.mrb[18].mxu0 }
 0x20d   : > { %vm948_vm2 = vcmp.gt.f32.partialorder %v774_v16, 0.0  ;;  %v996_v25 = vmul.f32 0.01, %v774_v16  ;;  %v1003_v26 = vmul.f32 0.01, %v893_v17  ;;  %v887_v28 = vpop.f32.mrb[19].mxu0  ;;  %v778_v30 = vadd.f32 %v777_v23, %v2386_v10 }
 0x20e   : > { %vm950_vm3 = vcmp.gt.f32.partialorder %v776_v21, 0.0  ;;  %v998_v27 = vmul.f32 0.01, %v776_v21  ;;  %v1043_v29 = vsel %vm947_vm1, %v772_v13, %v995_v20  ;;  %vm955_vm4 = vcmp.gt.f32.partialorder %v893_v17, 0.0 }
 0x20f   : > { %v896_v31 = vadd.f32 %v1848_v24, %v2388_v11  ;;  %vm949_vm5 = vcmp.gt.f32.partialorder %v885_v22, 0.0  ;;  %v997_v34 = vmul.f32 0.01, %v885_v22  ;;  %v888_v35 = vadd.f32 %v887_v28, %v2388_v11 }
 0x210   : > { %v1046_v32 = vsel %vm950_vm3, %v776_v21, %v998_v27  ;;  %vm951_vm6 = vcmp.gt.f32.partialorder %v778_v30, 0.0  ;;  %v999_v38 = vmul.f32 0.01, %v778_v30  ;;  %v1051_v40 = vsel %vm955_vm4, %v893_v17, %v1003_v26 }
 0x211   : > { %v1091_v37 = vpack.c.bf16 %v1046_v32, %v1043_v29  ;;  %vm958_vm7 = vcmp.gt.f32.partialorder %v896_v31, 0.0  ;;  %v781_v39 = vpop.f32.mrb[4].mxu1  ;;  %v1006_v41 = vmul.f32 0.01, %v896_v31  ;;  %vm952_vm8 = vcmp.gt.f32.partialorder %v888_v35, 0.0 }
 0x212   : > { %v2399_v42 = vadd.f32 %v781_v39, %v2384_v9  ;;  %v783_v43 = vpop.f32.mrb[5].mxu1  ;;  %v1000_v44 = vmul.f32 0.01, %v888_v35  ;;  %v1851_v46 = vpop.f32.mrb[20].mxu0  ;;  %v1044_v48 = vsel %vm948_vm2, %v774_v16, %v996_v25  ;;  %v1047_v53 = vsel %vm951_vm6, %v778_v30, %v999_v38 }
 0x213   : > { %v784_v45 = vadd.f32 %v783_v43, %v2386_v10  ;;  %v785_v47 = vpop.f32.mrb[6].mxu1  ;;  %v1054_v49 = vsel %vm958_vm7, %v896_v31, %v1006_v41  ;;  %v2404_v50 = vadd.f32 %v1851_v46, %v2388_v11  ;;  %v900_v51 = vpop.f32.mrb[21].mxu0  ;;  %v1045_v54 = vsel %vm949_vm5, %v885_v22, %v997_v34 }
 0x214   : > { %v787_v52 = vpop.f32.mrb[7].mxu1  ;;  %v1096_v55 = vpack.c.bf16 %v1054_v49, %v1051_v40  ;;  %vm953_vm9 = vcmp.gt.f32.partialorder %v2399_v42, 0.0  ;;  %v1001_v56 = vmul.f32 0.01, %v2399_v42  ;;  %v786_v57 = vadd.f32 %v785_v47, %v2384_v9  ;;  %v1852_v58 = vpop.f32.mrb[22].mxu0 }
 0x215   : > { %vm954_vm10 = vcmp.gt.f32.partialorder %v784_v45, 0.0  ;;  %v1002_v59 = vmul.f32 0.01, %v784_v45  ;;  %v901_v60 = vadd.f32 %v900_v51, %v2388_v11  ;;  %v788_v36 = vadd.f32 %v787_v52, %v2386_v10  ;;  %v903_v61 = vpop.f32.mrb[23].mxu0 }
 0x216   : > { %vm967_vm11 = vcmp.gt.f32.partialorder %v2404_v50, 0.0  ;;  %v1015_v62 = vmul.f32 0.01, %v2404_v50  ;;  %vm956_vm12 = vcmp.gt.f32.partialorder %v786_v57, 0.0  ;;  %v912_v63 = vadd.f32 %v1852_v58, %v2388_v11 }
 0x217   : > { %v1092_v0 = vpack.c.bf16 %v1047_v53, %v1044_v48  ;;  %v1004_v1 = vmul.f32 0.01, %v786_v57  ;;  %vm961_vm13 = vcmp.gt.f32.partialorder %v901_v60, 0.0  ;;  %vm957_vm14 = vcmp.gt.f32.partialorder %v788_v36, 0.0 }
 0x218   : > { %v1005_v2 = vmul.f32 0.01, %v788_v36  ;;  %v1009_v3 = vmul.f32 0.01, %v901_v60  ;;  %vm970_vm15 = vcmp.gt.f32.partialorder %v912_v63, 0.0  ;;  %v904_v33 = vadd.f32 %v903_v61, %v2388_v11 }
 0x219   : > { %1346 = vmatprep.mubr.bf16.mxu0 %v1092_v0  ;;  %v1048_v4 = vsel %vm952_vm8, %v888_v35, %v1000_v44  ;;  %v791_v5 = vpop.f32.mrb[8].mxu1  ;;  %v1018_v6 = vmul.f32 0.01, %v912_v63  ;;  %v1050_v14 = vsel %vm954_vm10, %v784_v45, %v1002_v59  ;;  %v1049_v35 = vsel %vm953_vm9, %v2399_v42, %v1001_v56 }
 0x21a   : > { %1347 = vmatmul.mubr.bf16.vlgmr.msra.gmra.mrb[32].mxu0 %v1091_v37  ;;  %v1093_v7 = vpack.c.bf16 %v1048_v4, %v1045_v54  ;;  %v2419_v8 = vadd.f32 %v791_v5, %v2384_v9  ;;  %v793_v12 = vpop.f32.mrb[9].mxu1  ;;  %v1855_v13 = vpop.f32.mrb[24].mxu0  ;;  %vm964_vm0 = vcmp.gt.f32.partialorder %v904_v33, 0.0  ;;  %v1053_v19 = vsel %vm957_vm14, %v788_v36, %v1005_v2 }
 0x21b   : > { %v794_v15 = vadd.f32 %v793_v12, %v2386_v10  ;;  %v795_v16 = vpop.f32.mrb[10].mxu1  ;;  %v2424_v17 = vadd.f32 %v1855_v13, %v2388_v11  ;;  %v916_v18 = vpop.f32.mrb[25].mxu0  ;;  %v1012_v20 = vmul.f32 0.01, %v904_v33  ;;  %v1095_v32 = vpack.c.bf16 %v1053_v19, %v1050_v14 }
 0x21c   : > { %1877 = vmatprep.mubr.bf16.mxu1 %v1093_v7  ;;  %v1007_v21 = vmul.f32 0.01, %v2419_v8  ;;  %v796_v22 = vadd.f32 %v795_v16, %v2384_v9  ;;  %v797_v23 = vpop.f32.mrb[11].mxu1  ;;  %v917_v24 = vadd.f32 %v916_v18, %v2388_v11  ;;  %v1856_v25 = vpop.f32.mrb[26].mxu0  ;;  %vm959_vm1 = vcmp.gt.f32.partialorder %v2419_v8, 0.0 }
 0x21d   : > { %1878 = vmatmul.mubr.bf16.vlgmr.msra.gmra.mrb[32].mxu1 %v1096_v55  ;;  %vm960_vm2 = vcmp.gt.f32.partialorder %v794_v15, 0.0  ;;  %v1008_v26 = vmul.f32 0.01, %v794_v15  ;;  %v1027_v27 = vmul.f32 0.01, %v2424_v17  ;;  %vm979_vm4 = vcmp.gt.f32.partialorder %v2424_v17, 0.0  ;;  %1354 = vmatprep.mubr.bf16.mxu0 %v1095_v32 }
 0x21e   : > { %vm962_vm3 = vcmp.gt.f32.partialorder %v796_v22, 0.0  ;;  %v1010_v28 = vmul.f32 0.01, %v796_v22  ;;  %v798_v29 = vadd.f32 %v797_v23, %v2386_v10  ;;  %vm973_vm5 = vcmp.gt.f32.partialorder %v917_v24, 0.0  ;;  %v919_v30 = vpop.f32.mrb[27].mxu0 }
 0x21f   : > { %v1021_v31 = vmul.f32 0.01, %v917_v24  ;;  %v928_v34 = vadd.f32 %v1856_v25, %v2388_v11  ;;  %v1052_v38 = vsel %vm956_vm12, %v786_v57, %v1004_v1  ;;  %v1057_v39 = vsel %vm961_vm13, %v901_v60, %v1009_v3 }
 0x220   : > { %vm963_vm6 = vcmp.gt.f32.partialorder %v798_v29, 0.0  ;;  %v1011_v37 = vmul.f32 0.01, %v798_v29  ;;  %v1094_v41 = vpack.c.bf16 %v1052_v38, %v1049_v35  ;;  %v1060_v43 = vsel %vm964_vm0, %v904_v33, %v1012_v20 }
 0x221   : > { %vm982_vm7 = vcmp.gt.f32.partialorder %v928_v34, 0.0  ;;  %v1030_v40 = vmul.f32 0.01, %v928_v34  ;;  %v801_v44 = vpop.f32.mrb[12].mxu1  ;;  %v1099_v45 = vpack.c.bf16 %v1060_v43, %v1057_v39  ;;  %v920_v46 = vadd.f32 %v919_v30, %v2388_v11 }
 0x222   : > { %v1063_v42 = vsel %vm967_vm11, %v2404_v50, %v1015_v62  ;;  %v1066_v47 = vsel %vm970_vm15, %v912_v63, %v1018_v6  ;;  %v803_v48 = vpop.f32.mrb[13].mxu1  ;;  %v1859_v49 = vpop.f32.mrb[28].mxu0  ;;  %1355 = vmatmul.mubr.bf16.gmra.mrb[36].mxu0 %v1094_v41  ;;  %v802_v52 = vadd.f32 %v801_v44, %v2384_v9  ;;  %v1056_v55 = vsel %vm960_vm2, %v794_v15, %v1008_v26 }
 0x223   : > { %v1102_v51 = vpack.c.bf16 %v1066_v47, %v1063_v42  ;;  %v804_v53 = vadd.f32 %v803_v48, %v2386_v10  ;;  %v805_v54 = vpop.f32.mrb[14].mxu1  ;;  %v932_v56 = vpop.f32.mrb[29].mxu0  ;;  %1881 = vmatprep.mubr.bf16.mxu1 %v1099_v45  ;;  %vm976_vm8 = vcmp.gt.f32.partialorder %v920_v46, 0.0  ;;  %v1024_v57 = vmul.f32 0.01, %v920_v46 }
 0x224   : > { %v806_v58 = vadd.f32 %v805_v54, %v2384_v9  ;;  %v807_v50 = vpop.f32.mrb[15].mxu1  ;;  %v1059_v59 = vsel %vm963_vm6, %v798_v29, %v1011_v37  ;;  %v1860_v60 = vpop.f32.mrb[30].mxu0  ;;  %vm965_vm9 = vcmp.gt.f32.partialorder %v802_v52, 0.0  ;;  %v1013_v36 = vmul.f32 0.01, %v802_v52 }
 0x225   : > { %1882 = vmatmul.mubr.bf16.gmra.mrb[36].mxu1 %v1102_v51  ;;  %vm966_vm10 = vcmp.gt.f32.partialorder %v804_v53, 0.0  ;;  %v1014_v61 = vmul.f32 0.01, %v804_v53  ;;  %v808_v63 = vadd.f32 %v807_v50, %v2386_v10  ;;  %v1098_v0 = vpack.c.bf16 %v1059_v59, %v1056_v55  ;;  %v935_v1 = vpop.f32.mrb[31].mxu0 }
 0x226   : > { %vm968_vm11 = vcmp.gt.f32.partialorder %v806_v58, 0.0  ;;  %v1016_v62 = vmul.f32 0.01, %v806_v58  ;;  %v1055_v2 = vsel %vm959_vm1, %v2419_v8, %v1007_v21  ;;  %v1058_v3 = vsel %vm962_vm3, %v796_v22, %v1010_v28 }
 0x227   : > { %v1069_v33 = vsel %vm973_vm5, %v917_v24, %v1021_v31  ;;  %v1072_v4 = vsel %vm976_vm8, %v920_v46, %v1024_v57  ;;  %vm969_vm12 = vcmp.gt.f32.partialorder %v808_v63, 0.0  ;;  %v1017_v5 = vmul.f32 0.01, %v808_v63  ;;  %1362 = vmatprep.mubr.bf16.mxu0 %v1098_v0 }
 0x228   : > { %v1097_v6 = vpack.c.bf16 %v1058_v3, %v1055_v2  ;;  %v1105_v7 = vpack.c.bf16 %v1072_v4, %v1069_v33  ;;  %v1075_v12 = vsel %vm979_vm4, %v2424_v17, %v1027_v27  ;;  %v1078_v13 = vsel %vm982_vm7, %v928_v34, %v1030_v40 }
 0x229   : > { %v811_v14 = vpop.f32.mrb[16].mxu1  ;;  %v941_v8 = vadd.f32 %v1859_v49, %v2388_v11  ;;  %v933_v15 = vadd.f32 %v932_v56, %v2388_v11  ;;  %v1108_v16 = vpack.c.bf16 %v1078_v13, %v1075_v12  ;;  %v1062_v20 = vsel %vm966_vm10, %v804_v53, %v1014_v61 }
 0x22a   : > { %1885 = vmatprep.mubr.bf16.mxu1 %v1105_v7  ;;  %v812_v18 = vadd.f32 %v811_v14, %v2384_v9  ;;  %v813_v19 = vpop.f32.mrb[17].mxu1  ;;  %v1065_v21 = vsel %vm969_vm12, %v808_v63, %v1017_v5  ;;  %1363 = vmatmul.mubr.bf16.gmra.mrb[40].mxu0 %v1097_v6  ;;  %v944_v32 = vadd.f32 %v1860_v60, %v2388_v11 }
 0x22b   : > { %v814_v22 = vadd.f32 %v813_v19, %v2386_v10  ;;  %v815_v23 = vpop.f32.mrb[18].mxu1  ;;  %vm991_vm13 = vcmp.gt.f32.partialorder %v941_v8, 0.0  ;;  %v1039_v17 = vmul.f32 0.01, %v941_v8  ;;  %vm985_vm14 = vcmp.gt.f32.partialorder %v933_v15, 0.0 }
 0x22c   : > { %vm971_vm15 = vcmp.gt.f32.partialorder %v812_v18, 0.0  ;;  %v1019_v24 = vmul.f32 0.01, %v812_v18  ;;  %v816_v25 = vadd.f32 %v815_v23, %v2384_v9  ;;  %v817_v26 = vpop.f32.mrb[19].mxu1  ;;  %v1033_v27 = vmul.f32 0.01, %v933_v15 }
 0x22d   : > { %1886 = vmatmul.mubr.bf16.gmra.mrb[40].mxu1 %v1108_v16  ;;  %vm972_vm0 = vcmp.gt.f32.partialorder %v814_v22, 0.0  ;;  %v1020_v28 = vmul.f32 0.01, %v814_v22  ;;  %v818_v29 = vadd.f32 %v817_v26, %v2386_v10  ;;  %v1101_v30 = vpack.c.bf16 %v1065_v21, %v1062_v20 }
 0x22e   : > { %vm974_vm1 = vcmp.gt.f32.partialorder %v816_v25, 0.0  ;;  %v1022_v31 = vmul.f32 0.01, %v816_v25  ;;  %v1061_v34 = vsel %vm965_vm9, %v802_v52, %v1013_v36  ;;  %v1064_v37 = vsel %vm968_vm11, %v806_v58, %v1016_v62 }
 0x22f   : > { %vm975_vm2 = vcmp.gt.f32.partialorder %v818_v29, 0.0  ;;  %v1023_v35 = vmul.f32 0.01, %v818_v29  ;;  %1370 = vmatprep.mubr.bf16.mxu0 %v1101_v30  ;;  %v936_v38 = vadd.f32 %v935_v1, %v2388_v11  ;;  %vm994_vm3 = vcmp.gt.f32.partialorder %v944_v32, 0.0 }
 0x230   : > { %v1042_v39 = vmul.f32 0.01, %v944_v32  ;;  %v1100_v40 = vpack.c.bf16 %v1064_v37, %v1061_v34  ;;  %v1068_v41 = vsel %vm972_vm0, %v814_v22, %v1020_v28  ;;  %v1067_v46 = vsel %vm971_vm15, %v812_v18, %v1019_v24 }
 0x231   : > { %vm988_vm4 = vcmp.gt.f32.partialorder %v936_v38, 0.0  ;;  %v1036_v43 = vmul.f32 0.01, %v936_v38  ;;  %v821_v44 = vpop.f32.mrb[20].mxu1  ;;  %v1071_v45 = vsel %vm975_vm2, %v818_v29, %v1023_v35  ;;  %v1070_v49 = vsel %vm974_vm1, %v816_v25, %v1022_v31 }
 0x232   : > { %v822_v42 = vadd.f32 %v821_v44, %v2384_v9  ;;  %v823_v47 = vpop.f32.mrb[21].mxu1  ;;  %v1104_v48 = vpack.c.bf16 %v1071_v45, %v1068_v41  ;;  %v1081_v51 = vsel %vm985_vm14, %v933_v15, %v1033_v27  ;;  %1371 = vmatmul.mubr.bf16.gmra.mrb[44].mxu0 %v1100_v40  ;;  %v1103_v53 = vpack.c.bf16 %v1070_v49, %v1067_v46 }
 0x233   : > { %v824_v11 = vadd.f32 %v823_v47, %v2386_v10  ;;  %v825_v52 = vpop.f32.mrb[22].mxu1  ;;  %v1084_v54 = vsel %vm988_vm4, %v936_v38, %v1036_v43  ;;  %v1087_v55 = vsel %vm991_vm13, %v941_v8, %v1039_v17  ;;  %v1090_v36 = vsel %vm994_vm3, %v944_v32, %v1042_v39 }
 0x234   : > { %v1025_v56 = vmul.f32 0.01, %v822_v42  ;;  %v826_v57 = vadd.f32 %v825_v52, %v2384_v9  ;;  %v827_v58 = vpop.f32.mrb[23].mxu1  ;;  %1378 = vmatprep.mubr.bf16.mxu0 %v1104_v48  ;;  %v1111_v50 = vpack.c.bf16 %v1084_v54, %v1081_v51  ;;  %vm977_vm5 = vcmp.gt.f32.partialorder %v822_v42, 0.0 }
 0x235   : > { %v1026_v59 = vmul.f32 0.01, %v824_v11  ;;  %v828_v60 = vadd.f32 %v827_v58, %v2386_v10  ;;  %vm978_vm6 = vcmp.gt.f32.partialorder %v824_v11, 0.0  ;;  %v1114_v62 = vpack.c.bf16 %v1090_v36, %v1087_v55 }
 0x236   : > { %vm980_vm7 = vcmp.gt.f32.partialorder %v826_v57, 0.0  ;;  %v1028_v61 = vmul.f32 0.01, %v826_v57  ;;  %1889 = vmatprep.mubr.bf16.mxu1 %v1111_v50  ;;  %v1073_v0 = vsel %vm977_vm5, %v822_v42, %v1025_v56 }
 0x237   : > { %vm981_vm8 = vcmp.gt.f32.partialorder %v828_v60, 0.0  ;;  %v1029_v63 = vmul.f32 0.01, %v828_v60  ;;  %1890 = vmatmul.mubr.bf16.gmra.mrb[44].mxu1 %v1114_v62  ;;  %v1074_v3 = vsel %vm978_vm6, %v824_v11, %v1026_v59 }
 0x238   : > { %v1076_v1 = vsel %vm980_vm7, %v826_v57, %v1028_v61 }
 0x239   : > { %v831_v2 = vpop.f32.mrb[24].mxu1  ;;  %v1077_v33 = vsel %vm981_vm8, %v828_v60, %v1029_v63  ;;  %v1106_v4 = vpack.c.bf16 %v1076_v1, %v1073_v0 }
 0x23a   : > { %v832_v5 = vadd.f32 %v831_v2, %v2384_v9  ;;  %v833_v6 = vpop.f32.mrb[25].mxu1  ;;  %v1107_v7 = vpack.c.bf16 %v1077_v33, %v1074_v3  ;;  %1379 = vmatmul.mubr.bf16.gmra.mrb[48].mxu0 %v1103_v53 }
 0x23b   : > { %v834_v12 = vadd.f32 %v833_v6, %v2386_v10  ;;  %v835_v13 = vpop.f32.mrb[26].mxu1 }
 0x23c   : > { %v1031_v14 = vmul.f32 0.01, %v832_v5  ;;  %v836_v8 = vadd.f32 %v835_v13, %v2384_v9  ;;  %v837_v15 = vpop.f32.mrb[27].mxu1  ;;  %1386 = vmatprep.mubr.bf16.mxu0 %v1107_v7  ;;  %vm983_vm9 = vcmp.gt.f32.partialorder %v832_v5, 0.0 }
 0x23d   : > { %v1032_v16 = vmul.f32 0.01, %v834_v12  ;;  %v838_v18 = vadd.f32 %v837_v15, %v2386_v10  ;;  %vm984_vm10 = vcmp.gt.f32.partialorder %v834_v12, 0.0 }
 0x23e   : > { %vm986_vm11 = vcmp.gt.f32.partialorder %v836_v8, 0.0  ;;  %v1034_v19 = vmul.f32 0.01, %v836_v8  ;;  %v1079_v21 = vsel %vm983_vm9, %v832_v5, %v1031_v14 }
 0x23f   : > { %vm987_vm12 = vcmp.gt.f32.partialorder %v838_v18, 0.0  ;;  %v1035_v20 = vmul.f32 0.01, %v838_v18  ;;  %v1080_v17 = vsel %vm984_vm10, %v834_v12, %v1032_v16 }
 0x240   : > { %v1082_v22 = vsel %vm986_vm11, %v836_v8, %v1034_v19 }
 0x241   : > { %v841_v23 = vpop.f32.mrb[28].mxu1  ;;  %v1083_v24 = vsel %vm987_vm12, %v838_v18, %v1035_v20  ;;  %v1109_v25 = vpack.c.bf16 %v1082_v22, %v1079_v21 }
 0x242   : > { %v842_v26 = vadd.f32 %v841_v23, %v2384_v9  ;;  %v843_v27 = vpop.f32.mrb[29].mxu1  ;;  %v1110_v28 = vpack.c.bf16 %v1083_v24, %v1080_v17  ;;  %1387 = vmatmul.mubr.bf16.gmra.mrb[52].mxu0 %v1106_v4 }
 0x243   : > { %v844_v29 = vadd.f32 %v843_v27, %v2386_v10  ;;  %v845_v30 = vpop.f32.mrb[30].mxu1 }
 0x244   : > { %v1037_v31 = vmul.f32 0.01, %v842_v26  ;;  %v846_v32 = vadd.f32 %v845_v30, %v2384_v9  ;;  %v847_v34 = vpop.f32.mrb[31].mxu1  ;;  %1394 = vmatprep.mubr.bf16.mxu0 %v1110_v28  ;;  %vm989_vm13 = vcmp.gt.f32.partialorder %v842_v26, 0.0 }
 0x245   : > { %v1038_v35 = vmul.f32 0.01, %v844_v29  ;;  %v848_v37 = vadd.f32 %v847_v34, %v2386_v10  ;;  %vm990_vm14 = vcmp.gt.f32.partialorder %v844_v29, 0.0  ;;  %v2495_v10 = vld [vmem:[%s2591_s6] ss:$0 sm:$0xff] }
 0x246   : > { %vm992_vm15 = vcmp.gt.f32.partialorder %v846_v32, 0.0  ;;  %v1040_v38 = vmul.f32 0.01, %v846_v32  ;;  %v1085_v40 = vsel %vm989_vm13, %v842_v26, %v1037_v31 }
 0x247   : > { %vm993_vm0 = vcmp.gt.f32.partialorder %v848_v37, 0.0  ;;  %v1041_v39 = vmul.f32 0.01, %v848_v37  ;;  %v1086_v43 = vsel %vm990_vm14, %v844_v29, %v1038_v35 }
 0x248   : > { %v1088_v41 = vsel %vm992_vm15, %v846_v32, %v1040_v38 }
 0x249   : > { %v1089_v44 = vsel %vm993_vm0, %v848_v37, %v1041_v39  ;;  %v1112_v45 = vpack.c.bf16 %v1088_v41, %v1085_v40 }
 0x24a   : > { %v1113_v46 = vpack.c.bf16 %v1089_v44, %v1086_v43  ;;  %1395 = vmatmul.mubr.bf16.gmra.mrb[56].mxu0 %v1109_v25 }
 0x24c   : > { %1402 = vmatprep.mubr.bf16.mxu0 %v1113_v46 }
 0x252   : > { %1403 = vmatmul.mubr.bf16.gmra.mrb[60].mxu0 %v1112_v45 }
 0x2ed   : > { %v1747_v9 = vpop.f32.mrb[32].mxu0 }
 0x2ee   : > { %v1748_v42 = vpop.f32.mrb[33].mxu0 }
 0x2ef   : > { %v1749_v47 = vadd.f32 %v1748_v42, %v1747_v9  ;;  %v1750_v48 = vpop.f32.mrb[34].mxu0 }
 0x2f0   : > { %v1879_v49 = vpop.f32.mrb[32].mxu1  ;;  %v1751_v51 = vpop.f32.mrb[35].mxu0 }
 0x2f1   : > { %v1349_v11 = vadd.f32 %v1749_v47, %v2495_v10  ;;  %v1445_v52 = vpop.f32.mrb[33].mxu1  ;;  %v1752_v53 = vadd.f32 %v1751_v51, %v1750_v48 }
 0x2f2   : > { %v1880_v54 = vpop.f32.mrb[34].mxu1 }
 0x2f3   : > { %v1446_v55 = vadd.f32 %v1445_v52, %v1349_v11  ;;  %v1352_v56 = vadd.f32 %v1752_v53, %v2495_v10  ;;  %v1448_v57 = vpop.f32.mrb[35].mxu1 }
 0x2f5   : > { %1508 = vst [vmem:[%s2501_s16] sm:$0xff] %v1446_v55  ;;  %v1449_v58 = vadd.f32 %v1448_v57, %v1352_v56  ;;  %v1753_v50 = vpop.f32.mrb[36].mxu0 }
 0x2f6   : > { %v1754_v59 = vpop.f32.mrb[37].mxu0 }
 0x2f7   : > { %1509 = vst [vmem:[%s2501_s16 + $0x8] sm:$0xff] %v1449_v58  ;;  %v1755_v60 = vadd.f32 %v1754_v59, %v1753_v50  ;;  %v1756_v61 = vpop.f32.mrb[38].mxu0 }
 0x2f8   : > { %v1883_v36 = vpop.f32.mrb[36].mxu1  ;;  %v1757_v63 = vpop.f32.mrb[39].mxu0 }
 0x2f9   : > { %v1461_v62 = vpop.f32.mrb[37].mxu1  ;;  %v1357_v0 = vadd.f32 %v1755_v60, %v2495_v10  ;;  %v1758_v1 = vadd.f32 %v1757_v63, %v1756_v61 }
 0x2fa   : > { %v1884_v2 = vpop.f32.mrb[38].mxu1 }
 0x2fb   : > { %v1464_v3 = vpop.f32.mrb[39].mxu1  ;;  %v1454_v33 = vadd.f32 %v1879_v49, %v1357_v0  ;;  %v1360_v4 = vadd.f32 %v1758_v1, %v2495_v10 }
 0x2fd   : > { %1510 = vst [vmem:[%s2501_s16 + $0x10] sm:$0xff] %v1454_v33  ;;  %v1457_v5 = vadd.f32 %v1880_v54, %v1360_v4  ;;  %v1759_v6 = vpop.f32.mrb[40].mxu0 }
 0x2fe   : > { %v1760_v7 = vpop.f32.mrb[41].mxu0 }
 0x2ff   : > { %1511 = vst [vmem:[%s2501_s16 + $0x18] sm:$0xff] %v1457_v5  ;;  %v1761_v12 = vadd.f32 %v1760_v7, %v1759_v6  ;;  %v1762_v13 = vpop.f32.mrb[42].mxu0 }
 0x300   : > { %v1887_v14 = vpop.f32.mrb[40].mxu1  ;;  %v1763_v8 = vpop.f32.mrb[43].mxu0 }
 0x301   : > { %v1477_v15 = vpop.f32.mrb[41].mxu1  ;;  %v1365_v16 = vadd.f32 %v1761_v12, %v2495_v10  ;;  %v1764_v18 = vadd.f32 %v1763_v8, %v1762_v13 }
 0x302   : > { %v1888_v19 = vpop.f32.mrb[42].mxu1 }
 0x303   : > { %v1480_v20 = vpop.f32.mrb[43].mxu1  ;;  %v1462_v21 = vadd.f32 %v1461_v62, %v1365_v16  ;;  %v1368_v22 = vadd.f32 %v1764_v18, %v2495_v10 }
 0x305   : > { %1512 = vst [vmem:[%s2501_s16 + $0x20] sm:$0xff] %v1462_v21  ;;  %v1465_v23 = vadd.f32 %v1464_v3, %v1368_v22  ;;  %v1765_v17 = vpop.f32.mrb[44].mxu0 }
 0x306   : > { %v1766_v24 = vpop.f32.mrb[45].mxu0 }
 0x307   : > { %1513 = vst [vmem:[%s2501_s16 + $0x28] sm:$0xff] %v1465_v23  ;;  %v1767_v25 = vadd.f32 %v1766_v24, %v1765_v17  ;;  %v1768_v26 = vpop.f32.mrb[46].mxu0 }
 0x308   : > { %v1769_v27 = vpop.f32.mrb[47].mxu0 }
 0x309   : > { %v1373_v28 = vadd.f32 %v1767_v25, %v2495_v10  ;;  %v1770_v29 = vadd.f32 %v1769_v27, %v1768_v26 }
 0x30a   : > { %v1891_v30 = vpop.f32.mrb[44].mxu1 }
 0x30b   : > { %v1470_v31 = vadd.f32 %v1883_v36, %v1373_v28  ;;  %v1376_v32 = vadd.f32 %v1770_v29, %v2495_v10  ;;  %v1493_v34 = vpop.f32.mrb[45].mxu1 }
 0x30c   : > { %v1892_v35 = vpop.f32.mrb[46].mxu1 }
 0x30d   : > { %1514 = vst [vmem:[%s2501_s16 + $0x30] sm:$0xff] %v1470_v31  ;;  %v1473_v37 = vadd.f32 %v1884_v2, %v1376_v32  ;;  %v1771_v38 = vpop.f32.mrb[48].mxu0  ;;  %v1496_v39 = vpop.f32.mrb[47].mxu1 }
 0x30e   : > { %v1772_v40 = vpop.f32.mrb[49].mxu0 }
 0x30f   : > { %1515 = vst [vmem:[%s2501_s16 + $0x38] sm:$0xff] %v1473_v37  ;;  %v1773_v41 = vadd.f32 %v1772_v40, %v1771_v38  ;;  %v1774_v43 = vpop.f32.mrb[50].mxu0 }
 0x310   : > { %v1775_v44 = vpop.f32.mrb[51].mxu0 }
 0x311   : > { %v1381_v45 = vadd.f32 %v1773_v41, %v2495_v10  ;;  %v1776_v46 = vadd.f32 %v1775_v44, %v1774_v43 }
 0x313   : > { %v1478_v9 = vadd.f32 %v1477_v15, %v1381_v45  ;;  %v1384_v42 = vadd.f32 %v1776_v46, %v2495_v10 }
 0x315   : > { %1516 = vst [vmem:[%s2501_s16 + $0x40] sm:$0xff] %v1478_v9  ;;  %v1481_v47 = vadd.f32 %v1480_v20, %v1384_v42  ;;  %v1777_v48 = vpop.f32.mrb[52].mxu0 }
 0x316   : > { %v1778_v49 = vpop.f32.mrb[53].mxu0 }
 0x317   : > { %1517 = vst [vmem:[%s2501_s16 + $0x48] sm:$0xff] %v1481_v47  ;;  %v1779_v51 = vadd.f32 %v1778_v49, %v1777_v48  ;;  %v1780_v11 = vpop.f32.mrb[54].mxu0 }
 0x318   : > { %v1781_v52 = vpop.f32.mrb[55].mxu0 }
 0x319   : > { %v1389_v53 = vadd.f32 %v1779_v51, %v2495_v10  ;;  %v1782_v54 = vadd.f32 %v1781_v52, %v1780_v11 }
 0x31b   : > { %v1486_v55 = vadd.f32 %v1887_v14, %v1389_v53  ;;  %v1392_v56 = vadd.f32 %v1782_v54, %v2495_v10 }
 0x31d   : > { %1518 = vst [vmem:[%s2501_s16 + $0x50] sm:$0xff] %v1486_v55  ;;  %v1489_v57 = vadd.f32 %v1888_v19, %v1392_v56  ;;  %v1783_v58 = vpop.f32.mrb[56].mxu0 }
 0x31e   : > { %v1784_v50 = vpop.f32.mrb[57].mxu0 }
 0x31f   : > { %1519 = vst [vmem:[%s2501_s16 + $0x58] sm:$0xff] %v1489_v57  ;;  %v1785_v59 = vadd.f32 %v1784_v50, %v1783_v58  ;;  %v1786_v60 = vpop.f32.mrb[58].mxu0 }
 0x320   : > { %v1787_v36 = vpop.f32.mrb[59].mxu0 }
 0x321   : > { %v1397_v61 = vadd.f32 %v1785_v59, %v2495_v10  ;;  %v1788_v62 = vadd.f32 %v1787_v36, %v1786_v60 }
 0x323   : > { %v1494_v63 = vadd.f32 %v1493_v34, %v1397_v61  ;;  %v1400_v0 = vadd.f32 %v1788_v62, %v2495_v10 }
 0x325   : > { %1520 = vst [vmem:[%s2501_s16 + $0x60] sm:$0xff] %v1494_v63  ;;  %v1497_v1 = vadd.f32 %v1496_v39, %v1400_v0  ;;  %v1789_v2 = vpop.f32.mrb[60].mxu0 }
 0x326   : > { %v1790_v3 = vpop.f32.mrb[61].mxu0 }
 0x327   : > { %1521 = vst [vmem:[%s2501_s16 + $0x68] sm:$0xff] %v1497_v1  ;;  %v1791_v33 = vadd.f32 %v1790_v3, %v1789_v2  ;;  %v1792_v4 = vpop.f32.mrb[62].mxu0 }
 0x328   : > { %v1793_v5 = vpop.f32.mrb[63].mxu0 }
 0x329   : > { %v1405_v6 = vadd.f32 %v1791_v33, %v2495_v10  ;;  %v1794_v7 = vadd.f32 %v1793_v5, %v1792_v4 }
 0x32b   : > { %v1502_v12 = vadd.f32 %v1891_v30, %v1405_v6  ;;  %v1408_v13 = vadd.f32 %v1794_v7, %v2495_v10 }
 0x32d   : > { %1522 = vst [vmem:[%s2501_s16 + $0x70] sm:$0xff] %v1502_v12  ;;  %v1505_v14 = vadd.f32 %v1892_v35, %v1408_v13 }
 0x32f   : > { %1523 = vst [vmem:[%s2501_s16 + $0x78] sm:$0xff] %v1505_v14 }
 0x330   : > { %2094 = shalt.err (!%p2091_p11)
}
 0x331   : > { %s2095_s15 = scalar_lea.hbm %s2536_s22, 2048  ;;  %s2099_s17 = scalar_lea.hbm %s2592_s7, 4096 }
 0x332   : > { %p2096_p13 = scmp.ne.s32.totalorder %s2536_s22, %s2095_s15  ;;  %p2100_p6 = scmp.lt.u32.totalorder %s2536_s22, %s2592_s7 }
 0x333   : > { %p2101_p9 = scmp.lt.u32.totalorder %s2099_s17, %s2095_s15  ;;  %p2103_p12 = scmp.lt.u32.totalorder %s2095_s15, %s2536_s22 }
 0x334   : > { %p2097_p0 = pnand %p2096_p13, %p2606_p1 }
 0x335   : > { %p2102_p10 = por %p2101_p9, %p2100_p6 }
 0x336   : > { %p2098_p5 = pneg %p2097_p0 }
 0x337   : > { %p2104_p2 = por %p2103_p12, %p2102_p10 }
 0x339   : > { %p2105_p3 = pnand %p2104_p2, %p2098_p5 }
 0x33b   : > { %2108 = shalt.err (!%p2105_p3)
}
 0x33c   : > { %s2161_s18 = smov 128   ;;  %s2162_s13 = smov 8  }
 0x33d   : > { %1901 = dma.vmem_to_hbm [thread:$0]  (%p2606_p1), %s2538_s20, 2048, %s2536_s22, %s2544_s23, %s2161_s18, %s2161_s18, %s2162_s13  }
 0x33e PF: > { %p1918_p4 = scmp.ge.s32.totalorder %s2151_s27, 2  ;;  %s1553_s21 = sand.u32 1, %s2139_s24  }
 0x33f   : > { %p2607_p7 = scmp.ne.s32.totalorder %s2598_s12, 0  ;;  %s1554_s28 = scalar_lea.sflag [#allocation4], %s1553_s21 }
 0x341   : > { %p1911_p8 = pnand %p1918_p4, %p2607_p7 }
 0x343   : > { %2134 = dma.done.wait (!%p1911_p8), %s1554_s28, 2048  }
 0x344   : > { %2136 = vsyncadd (!%p1911_p8), %s1554_s28, 4294965248  ;;  %s2608_s29 = sld [smem:[#allocation11_spill]]  ;;  %p19_p11 = scmp.ge.s32.totalorder %s2228_s30, 4  }
 0x345   : > { %s2609_s24 = smov %s2143_s25  ;;  %s2610_s25 = smov %s2147_s26 }
 0x346   : > { %s2612_s27 = smov %s2228_s30  ;;  %21 = sbr.rel (!%p19_p11) target bundleno = 5 (0x5), region = 92 }
 0x34a   : > { %s2611_s26 = smov %s2608_s29 }
 0x34d   :  { %1559 = vsyncpa [#allocation3], 1 }
 0x34e   :  { %1561 = vsyncpa [#allocation3 + $0x1], 1 }
 0x34f   :  { %1562 = vsyncpa [#allocation6], 1 }
 0x350   :  { %1563 = vsyncpa [#allocation4], 1 }
 0x351   :  { %1565 = vsyncpa [#allocation4 + $0x1], 1 }

</bundles_post_ra>
